<compile_context>
chip_gen: v6e
topology: v6e:2x2x1
jax: 0.10.0
libtpu: 0.0.40
codegen_flags: <defaults>
</compile_context>

<pallas_src>
import functools

import jax
import jax.numpy as jnp
from jax.experimental import pallas as pl
from jax.experimental.pallas import tpu as pltpu

LANE = 128      # TPU lane width
KPACK = 16      # bf16 sublane packing
TM_MAX = 1024   # lane-tile cap: safe on v5e/v6e (128 MiB VMEM) and v7x (64 MiB)


def _round_up(x, m):
    return ((x + m - 1) // m) * m


# ----------------------------------------------------------------------------
# Single fused Pallas kernel:  out = act( W @ P + bias )
#   W (Co, K) bf16 resident, P (K, tm) bf16 streamed over lane tiles,
#   bias (Co, 1) f32, output (Co, tm) lane-dense, stored in out dtype.
# ----------------------------------------------------------------------------
def _mm_bias_kernel(p_ref, w_ref, b_ref, o_ref, *, relu):
    y = jnp.dot(w_ref[...], p_ref[...], preferred_element_type=jnp.float32)
    y = y + b_ref[...]
    if relu:
        y = jnp.maximum(y, 0.0)
    o_ref[...] = y.astype(o_ref.dtype)


def _choose_m_tiling(M):
    """Return (Mp, tm).  Avoid padding M whenever possible; prefer >= 2 grid
    steps so ("parallel",) can shard the grid across v7x's two TensorCores."""
    if M % LANE == 0:
        units = M // LANE
        cands = [d for d in range(1, units + 1)
                 if units % d == 0 and d * LANE <= TM_MAX]
        multi = [d for d in cands if units // d >= 2]
        d = max(multi) if multi else max(cands)
        return M, d * LANE
    if M <= TM_MAX:
        return M, M                      # single full-extent block, no pad
    return _choose_m_tiling(_round_up(M, LANE))   # rare fallback: pad M


def _matmul_bias_act(P, W, bias, *, relu=True, out_dtype=jnp.bfloat16):
    """P: (K, M) bf16 patches, W: (Co, K) bf16 (BN scale folded), bias: (Co,) f32."""
    K, M = P.shape
    Co = W.shape[0]
    assert W.shape[1] == K
    Mp, tm = _choose_m_tiling(M)
    if Mp != M:
        P = jnp.pad(P, ((0, 0), (0, Mp - M)))
    b = bias.reshape(Co, 1).astype(jnp.float32)

    # NOTE: W / bias BlockSpecs are grid-invariant; single-buffering them
    # (pipeline_mode=pl.Buffered(1)) would shave a little VMEM but is left at
    # the default — the footprint here is far below the scoped limit.
    out = pl.pallas_call(
        functools.partial(_mm_bias_kernel, relu=relu),
        out_shape=jax.ShapeDtypeStruct((Co, Mp), out_dtype),
        grid=(Mp // tm,),
        in_specs=[
            pl.BlockSpec((K, tm), lambda i: (0, i)),    # streamed patch tile
            pl.BlockSpec((Co, K), lambda i: (0, 0)),    # resident weight
            pl.BlockSpec((Co, 1), lambda i: (0, 0)),    # resident bias
        ],
        out_specs=pl.BlockSpec((Co, tm), lambda i: (0, i)),
        compiler_params=pltpu.CompilerParams(
            dimension_semantics=("parallel",),
            vmem_limit_bytes=32 * 1024 * 1024),
    )(P, W, b)
    return out if Mp == M else out[:, :M]


# ----------------------------------------------------------------------------
# Conv3d(k=3, bias=False) + folded BatchNorm3d (+ ReLU), channels-first.
# Wm is the pre-packed (Cout, Kp) bf16 weight; bias the folded f32 BN bias.
# ----------------------------------------------------------------------------
def conv3d_bn(x, Wm, bias, *, stride, pad, relu=True, out_dtype=jnp.bfloat16):
    """x: (Cin, N, D, H, W) bf16."""
    Cin, N, D, H, Wd = x.shape
    Cout, Kp = Wm.shape
    k = 3
    if pad:
        x = jnp.pad(x, ((0, 0), (0, 0), (pad, pad), (pad, pad), (pad, pad)))
    Do = (D + 2 * pad - k) // stride + 1
    Ho = (H + 2 * pad - k) // stride + 1
    Wo = (Wd + 2 * pad - k) // stride + 1
    M = N * Do * Ho * Wo
    cols = []
    for kd in range(k):
        for kh in range(k):
            for kw in range(k):
                cols.append(x[:, :, kd:kd + stride * Do:stride,
                              kh:kh + stride * Ho:stride,
                              kw:kw + stride * Wo:stride].reshape(Cin, M))
    K = k * k * k * Cin
    if Kp > K:                                   # K-pad rides in the concat
        cols.append(jnp.zeros((Kp - K, M), x.dtype))
    P = jnp.concatenate(cols, axis=0)            # (Kp, M) bf16
    out = _matmul_bias_act(P, Wm, bias, relu=relu, out_dtype=out_dtype)
    return out.reshape(Cout, N, Do, Ho, Wo)


# ----------------------------------------------------------------------------
# Fused [ConvTranspose3d(3, s=2, p=1, op=1) + BN] + [1x1 ConvBN skip] + ReLU,
# computed as one sub-pixel (parity-packed) matmul + wrapper pixel shuffle.
# Wf is the pre-packed fused (8*Cout, Kp) bf16 weight, bias8 the (8*Cout,) f32
# folded bias (deconv BN bias + redir BN bias, parity-replicated).
# ----------------------------------------------------------------------------
def deconv3d_redir_bn(x, xr, Wf, bias8, *, out_dtype=jnp.bfloat16):
    """x: (Cin, N, D, H, W) bf16;  xr: (Cr, N, 2D, 2H, 2W) bf16 skip input."""
    Cin, N, D, H, Wd = x.shape
    Cr = xr.shape[0]
    Cout = Wf.shape[0] // 8
    Kp = Wf.shape[1]
    M = N * D * H * Wd

    # main transposed conv -> ordinary k=2 conv with 8*Cout parity outputs
    xp = jnp.pad(x, ((0, 0), (0, 0), (0, 1), (0, 1), (0, 1)))
    cols = [xp[:, :, ud:ud + D, uh:uh + H, uw:uw + Wd].reshape(Cin, M)
            for ud in (0, 1) for uh in (0, 1) for uw in (0, 1)]
    # 1x1 redir ConvBN skip, parity-replicated columns
    cols += [xr[:, :, qd::2, qh::2, qw::2].reshape(Cr, M)
             for qd in (0, 1) for qh in (0, 1) for qw in (0, 1)]
    K = 8 * Cin + 8 * Cr
    if Kp > K:
        cols.append(jnp.zeros((Kp - K, M), x.dtype))
    P = jnp.concatenate(cols, axis=0)                        # (Kp, M) bf16

    out = _matmul_bias_act(P, Wf, bias8, relu=True, out_dtype=out_dtype)
    # pixel shuffle: row index = ((qd*2+qh)*2+qw)*Cout + co
    out = out.reshape(2, 2, 2, Cout, N, D, H, Wd)
    out = jnp.transpose(out, (3, 4, 5, 0, 6, 1, 7, 2))
    return out.reshape(Cout, N, 2 * D, 2 * H, 2 * Wd)


# ----------------------------------------------------------------------------
# One-time parameter packing (run OUTSIDE the jitted forward):
# BN folding, weight reshapes, deconv+redir fusion, K-padding, bf16 cast.
# ----------------------------------------------------------------------------
def _pack_conv(W, scale, bias):
    Cout, Cin, k, _, _ = W.shape
    Wm = jnp.transpose(W, (0, 2, 3, 4, 1)).reshape(Cout, k * k * k * Cin)
    Wm = Wm * scale[:, None]                                 # fold BN scale
    K = Wm.shape[1]
    Kp = _round_up(K, KPACK)
    Wm = jnp.pad(Wm, ((0, 0), (0, Kp - K))).astype(jnp.bfloat16)
    return Wm, bias.astype(jnp.float32)


def _parity_tap(parity, u):
    # transposed conv (k=3, s=2, p=1, op=1) as a 2-tap conv reading x[j + u]:
    #   even outputs: w[1]*x[j];  odd outputs: w[2]*x[j] + w[0]*x[j+1]
    if parity == 0:
        return 1 if u == 0 else None
    return 2 if u == 0 else 0


def _pack_deconv_redir(Wt, scale, bias, Wr, scale_r, bias_r):
    """Wt: (Cin, Cout, 3, 3, 3) torch ConvTranspose3d; Wr: (Cout, Cr, 1, 1, 1)."""
    Cin, Cout = Wt.shape[0], Wt.shape[1]
    Cr = Wr.shape[1]
    zero = jnp.zeros((Cout, Cin), Wt.dtype)
    rows = []
    for qd in (0, 1):
        for qh in (0, 1):
            for qw in (0, 1):
                blks = []
                for ud in (0, 1):
                    for uh in (0, 1):
                        for uw in (0, 1):
                            td = _parity_tap(qd, ud)
                            th = _parity_tap(qh, uh)
                            tw = _parity_tap(qw, uw)
                            if td is None or th is None or tw is None:
                                blks.append(zero)
                            else:
                                blks.append(Wt[:, :, td, th, tw].T)  # (Cout, Cin)
                rows.append(jnp.concatenate(blks, axis=1))           # (Cout, 8*Cin)
    W_main = jnp.concatenate(rows, axis=0)                           # (8*Cout, 8*Cin)
    W_main = W_main * jnp.tile(scale, 8)[:, None]                    # fold BN scale

    Wr2 = Wr.reshape(Cout, Cr) * scale_r[:, None]                    # fold BN scale
    W_redir = jnp.kron(jnp.eye(8, dtype=Wr2.dtype), Wr2)             # (8*Cout, 8*Cr)

    Wf = jnp.concatenate([W_main, W_redir], axis=1)                  # (8*Cout, K)
    K = Wf.shape[1]
    Kp = _round_up(K, KPACK)
    Wf = jnp.pad(Wf, ((0, 0), (0, Kp - K))).astype(jnp.bfloat16)
    b8 = jnp.tile(bias + bias_r, 8).astype(jnp.float32)
    return Wf, b8


def pack_params(p):
    return {
        'conv1':   _pack_conv(*p['conv1']),
        'conv2':   _pack_conv(*p['conv2']),
        'conv3':   _pack_conv(*p['conv3']),
        'conv4':   _pack_conv(*p['conv4']),
        'deconv5': _pack_deconv_redir(*p['conv5'], *p['redir2']),
        'deconv6': _pack_deconv_redir(*p['conv6'], *p['redir1']),
    }


# ----------------------------------------------------------------------------
# hourglass forward (matches the PyTorch module graph); 6 pallas_calls total.
# ----------------------------------------------------------------------------
def hourglass_forward(x_ncdhw, pk):
    # NCDHW -> channels-first (C, N, D, H, W), bf16 once, up front
    x = jnp.transpose(x_ncdhw, (1, 0, 2, 3, 4)).astype(jnp.bfloat16)
    c1 = conv3d_bn(x,  *pk['conv1'], stride=2, pad=1)
    c2 = conv3d_bn(c1, *pk['conv2'], stride=1, pad=1)
    c3 = conv3d_bn(c2, *pk['conv3'], stride=2, pad=1)
    c4 = conv3d_bn(c3, *pk['conv4'], stride=1, pad=1)
    c5 = deconv3d_redir_bn(c4, c2, *pk['deconv5'])                     # + redir2 + relu
    c6 = deconv3d_redir_bn(c5, x,  *pk['deconv6'], out_dtype=jnp.float32)  # + redir1 + relu
    return jnp.transpose(c6, (1, 0, 2, 3, 4))                          # back to NCDHW


# ----------------------------------------------------------------------------
# Deterministic parameter construction (shapes from hourglass.__init__)
# ----------------------------------------------------------------------------
def make_params(key, C):
    eps = 1e-5

    def conv_w(k, cout, cin, ksz):
        return 0.1 * jax.random.normal(k, (cout, cin, ksz, ksz, ksz), jnp.float32)

    def bn(k, c):
        k1, k2, k3, k4 = jax.random.split(k, 4)
        gamma = 1.0 + 0.1 * jax.random.normal(k1, (c,), jnp.float32)
        beta = 0.1 * jax.random.normal(k2, (c,), jnp.float32)
        mean = 0.1 * jax.random.normal(k3, (c,), jnp.float32)
        var = 1.0 + 0.1 * jax.random.uniform(k4, (c,), jnp.float32)
        scale = gamma / jnp.sqrt(var + eps)
        bias = beta - mean * scale
        return scale, bias

    ks = jax.random.split(key, 16)
    p = {}
    p['conv1'] = (conv_w(ks[0], 2 * C, C, 3),) + bn(ks[1], 2 * C)
    p['conv2'] = (conv_w(ks[2], 2 * C, 2 * C, 3),) + bn(ks[3], 2 * C)
    p['conv3'] = (conv_w(ks[4], 4 * C, 2 * C, 3),) + bn(ks[5], 4 * C)
    p['conv4'] = (conv_w(ks[6], 4 * C, 4 * C, 3),) + bn(ks[7], 4 * C)
    # ConvTranspose3d weights are (Cin, Cout, k, k, k)
    p['conv5'] = (0.1 * jax.random.normal(ks[8], (4 * C, 2 * C, 3, 3, 3), jnp.float32),) + bn(ks[9], 2 * C)
    p['conv6'] = (0.1 * jax.random.normal(ks[10], (2 * C, C, 3, 3, 3), jnp.float32),) + bn(ks[11], C)
    p['redir1'] = (conv_w(ks[12], C, C, 1),) + bn(ks[13], C)
    p['redir2'] = (conv_w(ks[14], 2 * C, 2 * C, 1),) + bn(ks[15], 2 * C)
    return p


if __name__ == "__main__":
    C = 4                                   # in_channels
    key = jax.random.PRNGKey(0)
    kx, kp = jax.random.split(key)
    # cost-volume style 5-D input: (N, C, D, H, W)
    x = jax.random.normal(kx, (2, C, 8, 8, 8), jnp.float32)
    params = make_params(kp, C)

    packed = pack_params(params)            # one-time fold, outside the jitted forward
    packed = jax.tree_util.tree_map(jax.block_until_ready, packed)

    fwd = jax.jit(hourglass_forward)
    out = jax.block_until_ready(fwd(x, packed))
    assert out.shape == (2, C, 8, 8, 8), out.shape
    assert bool(jnp.all(out >= 0.0))        # final ReLU
    print("KERNEL_OK")
</pallas_src>

<mosaic_0001>
module attributes {stable_mosaic.version = 11 : i64} {
  func.func @_mm_bias_kernel(%arg0: i32, %arg1: memref<112x128xbf16, #tpu.memory_space<vmem>>, %arg2: memref<8x112xbf16, #tpu.memory_space<vmem>>, %arg3: memref<8x1xf32, #tpu.memory_space<vmem>>, %arg4: memref<8x128xbf16, #tpu.memory_space<vmem>>) attributes {dimension_semantics = [#tpu.dimension_semantics<parallel>], iteration_bounds = array<i64: 1>, scalar_prefetch = 0 : i64, scratch_operands = 0 : i64, tpu.core_type = #tpu.core_type<tc>, window_params = [{transform_indices = @transform_0, window_bounds = array<i64: 112, 128>}, {pipeline_mode = #tpu.pipeline_mode<synchronous>, transform_indices = @transform_1, window_bounds = array<i64: 8, 112>}, {pipeline_mode = #tpu.pipeline_mode<synchronous>, transform_indices = @transform_2, window_bounds = array<i64: 8, 1>}, {transform_indices = @transform_3, window_bounds = array<i64: 8, 128>}]} {
    %c0 = arith.constant 0 : index
    %c0_0 = arith.constant 0 : index
    %0 = vector.load %arg2[%c0, %c0_0] : memref<8x112xbf16, #tpu.memory_space<vmem>>, vector<8x112xbf16>
    %c0_1 = arith.constant 0 : index
    %c0_2 = arith.constant 0 : index
    %1 = vector.load %arg1[%c0_1, %c0_2] : memref<112x128xbf16, #tpu.memory_space<vmem>>, vector<112x128xbf16>
    %cst = arith.constant dense<0.000000e+00> : vector<8x128xf32>
    %2 = tpu.matmul %0, %1, %cst {dimension_numbers = #tpu.dot_dimension_numbers<[1], [0], [0], [1], [0, 0, 1, 1], [], []>} : vector<8x112xbf16>, vector<112x128xbf16>, vector<8x128xf32> -> vector<8x128xf32>
    %c0_3 = arith.constant 0 : index
    %c0_4 = arith.constant 0 : index
    %3 = vector.load %arg3[%c0_3, %c0_4] : memref<8x1xf32, #tpu.memory_space<vmem>>, vector<8x1xf32>
    %4 = vector.broadcast %3 : vector<8x1xf32> to vector<8x128xf32>
    %5 = arith.addf %2, %4 : vector<8x128xf32>
    %cst_5 = arith.constant 0.000000e+00 : f32
    %6 = vector.broadcast %cst_5 : f32 to vector<8x128xf32>
    %7 = arith.maximumf %5, %6 : vector<8x128xf32>
    %8 = arith.truncf %7 : vector<8x128xf32> to vector<8x128xbf16>
    %c0_6 = arith.constant 0 : index
    %c0_7 = arith.constant 0 : index
    %9 = vector.load %arg4[%c0_6, %c0_7] : memref<8x128xbf16, #tpu.memory_space<vmem>>, vector<8x128xbf16>
    tpu.vector_store %arg4[%c0_6, %c0_7], %8 {strides = array<i32>} : memref<8x128xbf16, #tpu.memory_space<vmem>>, vector<8x128xbf16>,
    return
  }
  func.func @transform_0(%arg0: i32) -> (i32, i32) {
    %c0_i32 = arith.constant 0 : i32
    %c0_i32_0 = arith.constant 0 : i32
    return %c0_i32, %arg0 : i32, i32
  }
  func.func @transform_1(%arg0: i32) -> (i32, i32) {
    %c0_i32 = arith.constant 0 : i32
    %c0_i32_0 = arith.constant 0 : i32
    %c0_i32_1 = arith.constant 0 : i32
    return %c0_i32, %c0_i32_0 : i32, i32
  }
  func.func @transform_2(%arg0: i32) -> (i32, i32) {
    %c0_i32 = arith.constant 0 : i32
    %c0_i32_0 = arith.constant 0 : i32
    %c0_i32_1 = arith.constant 0 : i32
    return %c0_i32, %c0_i32_0 : i32, i32
  }
  func.func @transform_3(%arg0: i32) -> (i32, i32) {
    %c0_i32 = arith.constant 0 : i32
    %c0_i32_0 = arith.constant 0 : i32
    return %c0_i32, %arg0 : i32, i32
  }
}

module attributes {stable_mosaic.version = 11 : i64} {
  func.func @_mm_bias_kernel(%arg0: i32, %arg1: memref<224x128xbf16, #tpu.memory_space<vmem>>, %arg2: memref<8x224xbf16, #tpu.memory_space<vmem>>, %arg3: memref<8x1xf32, #tpu.memory_space<vmem>>, %arg4: memref<8x128xbf16, #tpu.memory_space<vmem>>) attributes {dimension_semantics = [#tpu.dimension_semantics<parallel>], iteration_bounds = array<i64: 1>, scalar_prefetch = 0 : i64, scratch_operands = 0 : i64, tpu.core_type = #tpu.core_type<tc>, window_params = [{transform_indices = @transform_0, window_bounds = array<i64: 224, 128>}, {pipeline_mode = #tpu.pipeline_mode<synchronous>, transform_indices = @transform_1, window_bounds = array<i64: 8, 224>}, {pipeline_mode = #tpu.pipeline_mode<synchronous>, transform_indices = @transform_2, window_bounds = array<i64: 8, 1>}, {transform_indices = @transform_3, window_bounds = array<i64: 8, 128>}]} {
    %c0 = arith.constant 0 : index
    %c0_0 = arith.constant 0 : index
    %0 = vector.load %arg2[%c0, %c0_0] : memref<8x224xbf16, #tpu.memory_space<vmem>>, vector<8x224xbf16>
    %c0_1 = arith.constant 0 : index
    %c0_2 = arith.constant 0 : index
    %1 = vector.load %arg1[%c0_1, %c0_2] : memref<224x128xbf16, #tpu.memory_space<vmem>>, vector<224x128xbf16>
    %cst = arith.constant dense<0.000000e+00> : vector<8x128xf32>
    %2 = tpu.matmul %0, %1, %cst {dimension_numbers = #tpu.dot_dimension_numbers<[1], [0], [0], [1], [0, 0, 1, 1], [], []>} : vector<8x224xbf16>, vector<224x128xbf16>, vector<8x128xf32> -> vector<8x128xf32>
    %c0_3 = arith.constant 0 : index
    %c0_4 = arith.constant 0 : index
    %3 = vector.load %arg3[%c0_3, %c0_4] : memref<8x1xf32, #tpu.memory_space<vmem>>, vector<8x1xf32>
    %4 = vector.broadcast %3 : vector<8x1xf32> to vector<8x128xf32>
    %5 = arith.addf %2, %4 : vector<8x128xf32>
    %cst_5 = arith.constant 0.000000e+00 : f32
    %6 = vector.broadcast %cst_5 : f32 to vector<8x128xf32>
    %7 = arith.maximumf %5, %6 : vector<8x128xf32>
    %8 = arith.truncf %7 : vector<8x128xf32> to vector<8x128xbf16>
    %c0_6 = arith.constant 0 : index
    %c0_7 = arith.constant 0 : index
    %9 = vector.load %arg4[%c0_6, %c0_7] : memref<8x128xbf16, #tpu.memory_space<vmem>>, vector<8x128xbf16>
    tpu.vector_store %arg4[%c0_6, %c0_7], %8 {strides = array<i32>} : memref<8x128xbf16, #tpu.memory_space<vmem>>, vector<8x128xbf16>,
    return
  }
  func.func @transform_0(%arg0: i32) -> (i32, i32) {
    %c0_i32 = arith.constant 0 : i32
    %c0_i32_0 = arith.constant 0 : i32
    return %c0_i32, %arg0 : i32, i32
  }
  func.func @transform_1(%arg0: i32) -> (i32, i32) {
    %c0_i32 = arith.constant 0 : i32
    %c0_i32_0 = arith.constant 0 : i32
    %c0_i32_1 = arith.constant 0 : i32
    return %c0_i32, %c0_i32_0 : i32, i32
  }
  func.func @transform_2(%arg0: i32) -> (i32, i32) {
    %c0_i32 = arith.constant 0 : i32
    %c0_i32_0 = arith.constant 0 : i32
    %c0_i32_1 = arith.constant 0 : i32
    return %c0_i32, %c0_i32_0 : i32, i32
  }
  func.func @transform_3(%arg0: i32) -> (i32, i32) {
    %c0_i32 = arith.constant 0 : i32
    %c0_i32_0 = arith.constant 0 : i32
    return %c0_i32, %arg0 : i32, i32
  }
}

module attributes {stable_mosaic.version = 11 : i64} {
  func.func @_mm_bias_kernel(%arg0: i32, %arg1: memref<224x16xbf16, #tpu.memory_space<vmem>>, %arg2: memref<16x224xbf16, #tpu.memory_space<vmem>>, %arg3: memref<16x1xf32, #tpu.memory_space<vmem>>, %arg4: memref<16x16xbf16, #tpu.memory_space<vmem>>) attributes {dimension_semantics = [#tpu.dimension_semantics<parallel>], iteration_bounds = array<i64: 1>, scalar_prefetch = 0 : i64, scratch_operands = 0 : i64, tpu.core_type = #tpu.core_type<tc>, window_params = [{transform_indices = @transform_0, window_bounds = array<i64: 224, 16>}, {pipeline_mode = #tpu.pipeline_mode<synchronous>, transform_indices = @transform_1, window_bounds = array<i64: 16, 224>}, {pipeline_mode = #tpu.pipeline_mode<synchronous>, transform_indices = @transform_2, window_bounds = array<i64: 16, 1>}, {transform_indices = @transform_3, window_bounds = array<i64: 16, 16>}]} {
    %c0 = arith.constant 0 : index
    %c0_0 = arith.constant 0 : index
    %0 = vector.load %arg2[%c0, %c0_0] : memref<16x224xbf16, #tpu.memory_space<vmem>>, vector<16x224xbf16>
    %c0_1 = arith.constant 0 : index
    %c0_2 = arith.constant 0 : index
    %1 = vector.load %arg1[%c0_1, %c0_2] : memref<224x16xbf16, #tpu.memory_space<vmem>>, vector<224x16xbf16>
    %cst = arith.constant dense<0.000000e+00> : vector<16x16xf32>
    %2 = tpu.matmul %0, %1, %cst {dimension_numbers = #tpu.dot_dimension_numbers<[1], [0], [0], [1], [0, 0, 1, 1], [], []>} : vector<16x224xbf16>, vector<224x16xbf16>, vector<16x16xf32> -> vector<16x16xf32>
    %c0_3 = arith.constant 0 : index
    %c0_4 = arith.constant 0 : index
    %3 = vector.load %arg3[%c0_3, %c0_4] : memref<16x1xf32, #tpu.memory_space<vmem>>, vector<16x1xf32>
    %4 = vector.broadcast %3 : vector<16x1xf32> to vector<16x16xf32>
    %5 = arith.addf %2, %4 : vector<16x16xf32>
    %cst_5 = arith.constant 0.000000e+00 : f32
    %6 = vector.broadcast %cst_5 : f32 to vector<16x16xf32>
    %7 = arith.maximumf %5, %6 : vector<16x16xf32>
    %8 = arith.truncf %7 : vector<16x16xf32> to vector<16x16xbf16>
    %c0_6 = arith.constant 0 : index
    %c0_7 = arith.constant 0 : index
    %9 = vector.load %arg4[%c0_6, %c0_7] : memref<16x16xbf16, #tpu.memory_space<vmem>>, vector<16x16xbf16>
    tpu.vector_store %arg4[%c0_6, %c0_7], %8 {strides = array<i32>} : memref<16x16xbf16, #tpu.memory_space<vmem>>, vector<16x16xbf16>,
    return
  }
  func.func @transform_0(%arg0: i32) -> (i32, i32) {
    %c0_i32 = arith.constant 0 : i32
    %c0_i32_0 = arith.constant 0 : i32
    return %c0_i32, %arg0 : i32, i32
  }
  func.func @transform_1(%arg0: i32) -> (i32, i32) {
    %c0_i32 = arith.constant 0 : i32
    %c0_i32_0 = arith.constant 0 : i32
    %c0_i32_1 = arith.constant 0 : i32
    return %c0_i32, %c0_i32_0 : i32, i32
  }
  func.func @transform_2(%arg0: i32) -> (i32, i32) {
    %c0_i32 = arith.constant 0 : i32
    %c0_i32_0 = arith.constant 0 : i32
    %c0_i32_1 = arith.constant 0 : i32
    return %c0_i32, %c0_i32_0 : i32, i32
  }
  func.func @transform_3(%arg0: i32) -> (i32, i32) {
    %c0_i32 = arith.constant 0 : i32
    %c0_i32_0 = arith.constant 0 : i32
    return %c0_i32, %arg0 : i32, i32
  }
}

module attributes {stable_mosaic.version = 11 : i64} {
  func.func @_mm_bias_kernel(%arg0: i32, %arg1: memref<432x16xbf16, #tpu.memory_space<vmem>>, %arg2: memref<16x432xbf16, #tpu.memory_space<vmem>>, %arg3: memref<16x1xf32, #tpu.memory_space<vmem>>, %arg4: memref<16x16xbf16, #tpu.memory_space<vmem>>) attributes {dimension_semantics = [#tpu.dimension_semantics<parallel>], iteration_bounds = array<i64: 1>, scalar_prefetch = 0 : i64, scratch_operands = 0 : i64, tpu.core_type = #tpu.core_type<tc>, window_params = [{transform_indices = @transform_0, window_bounds = array<i64: 432, 16>}, {pipeline_mode = #tpu.pipeline_mode<synchronous>, transform_indices = @transform_1, window_bounds = array<i64: 16, 432>}, {pipeline_mode = #tpu.pipeline_mode<synchronous>, transform_indices = @transform_2, window_bounds = array<i64: 16, 1>}, {transform_indices = @transform_3, window_bounds = array<i64: 16, 16>}]} {
    %c0 = arith.constant 0 : index
    %c0_0 = arith.constant 0 : index
    %0 = vector.load %arg2[%c0, %c0_0] : memref<16x432xbf16, #tpu.memory_space<vmem>>, vector<16x432xbf16>
    %c0_1 = arith.constant 0 : index
    %c0_2 = arith.constant 0 : index
    %1 = vector.load %arg1[%c0_1, %c0_2] : memref<432x16xbf16, #tpu.memory_space<vmem>>, vector<432x16xbf16>
    %cst = arith.constant dense<0.000000e+00> : vector<16x16xf32>
    %2 = tpu.matmul %0, %1, %cst {dimension_numbers = #tpu.dot_dimension_numbers<[1], [0], [0], [1], [0, 0, 1, 1], [], []>} : vector<16x432xbf16>, vector<432x16xbf16>, vector<16x16xf32> -> vector<16x16xf32>
    %c0_3 = arith.constant 0 : index
    %c0_4 = arith.constant 0 : index
    %3 = vector.load %arg3[%c0_3, %c0_4] : memref<16x1xf32, #tpu.memory_space<vmem>>, vector<16x1xf32>
    %4 = vector.broadcast %3 : vector<16x1xf32> to vector<16x16xf32>
    %5 = arith.addf %2, %4 : vector<16x16xf32>
    %cst_5 = arith.constant 0.000000e+00 : f32
    %6 = vector.broadcast %cst_5 : f32 to vector<16x16xf32>
    %7 = arith.maximumf %5, %6 : vector<16x16xf32>
    %8 = arith.truncf %7 : vector<16x16xf32> to vector<16x16xbf16>
    %c0_6 = arith.constant 0 : index
    %c0_7 = arith.constant 0 : index
    %9 = vector.load %arg4[%c0_6, %c0_7] : memref<16x16xbf16, #tpu.memory_space<vmem>>, vector<16x16xbf16>
    tpu.vector_store %arg4[%c0_6, %c0_7], %8 {strides = array<i32>} : memref<16x16xbf16, #tpu.memory_space<vmem>>, vector<16x16xbf16>,
    return
  }
  func.func @transform_0(%arg0: i32) -> (i32, i32) {
    %c0_i32 = arith.constant 0 : i32
    %c0_i32_0 = arith.constant 0 : i32
    return %c0_i32, %arg0 : i32, i32
  }
  func.func @transform_1(%arg0: i32) -> (i32, i32) {
    %c0_i32 = arith.constant 0 : i32
    %c0_i32_0 = arith.constant 0 : i32
    %c0_i32_1 = arith.constant 0 : i32
    return %c0_i32, %c0_i32_0 : i32, i32
  }
  func.func @transform_2(%arg0: i32) -> (i32, i32) {
    %c0_i32 = arith.constant 0 : i32
    %c0_i32_0 = arith.constant 0 : i32
    %c0_i32_1 = arith.constant 0 : i32
    return %c0_i32, %c0_i32_0 : i32, i32
  }
  func.func @transform_3(%arg0: i32) -> (i32, i32) {
    %c0_i32 = arith.constant 0 : i32
    %c0_i32_0 = arith.constant 0 : i32
    return %c0_i32, %arg0 : i32, i32
  }
}

module attributes {stable_mosaic.version = 11 : i64} {
  func.func @_mm_bias_kernel(%arg0: i32, %arg1: memref<192x16xbf16, #tpu.memory_space<vmem>>, %arg2: memref<64x192xbf16, #tpu.memory_space<vmem>>, %arg3: memref<64x1xf32, #tpu.memory_space<vmem>>, %arg4: memref<64x16xbf16, #tpu.memory_space<vmem>>) attributes {dimension_semantics = [#tpu.dimension_semantics<parallel>], iteration_bounds = array<i64: 1>, scalar_prefetch = 0 : i64, scratch_operands = 0 : i64, tpu.core_type = #tpu.core_type<tc>, window_params = [{transform_indices = @transform_0, window_bounds = array<i64: 192, 16>}, {pipeline_mode = #tpu.pipeline_mode<synchronous>, transform_indices = @transform_1, window_bounds = array<i64: 64, 192>}, {pipeline_mode = #tpu.pipeline_mode<synchronous>, transform_indices = @transform_2, window_bounds = array<i64: 64, 1>}, {transform_indices = @transform_3, window_bounds = array<i64: 64, 16>}]} {
    %c0 = arith.constant 0 : index
    %c0_0 = arith.constant 0 : index
    %0 = vector.load %arg2[%c0, %c0_0] : memref<64x192xbf16, #tpu.memory_space<vmem>>, vector<64x192xbf16>
    %c0_1 = arith.constant 0 : index
    %c0_2 = arith.constant 0 : index
    %1 = vector.load %arg1[%c0_1, %c0_2] : memref<192x16xbf16, #tpu.memory_space<vmem>>, vector<192x16xbf16>
    %cst = arith.constant dense<0.000000e+00> : vector<64x16xf32>
    %2 = tpu.matmul %0, %1, %cst {dimension_numbers = #tpu.dot_dimension_numbers<[1], [0], [0], [1], [0, 0, 1, 1], [], []>} : vector<64x192xbf16>, vector<192x16xbf16>, vector<64x16xf32> -> vector<64x16xf32>
    %c0_3 = arith.constant 0 : index
    %c0_4 = arith.constant 0 : index
    %3 = vector.load %arg3[%c0_3, %c0_4] : memref<64x1xf32, #tpu.memory_space<vmem>>, vector<64x1xf32>
    %4 = vector.broadcast %3 : vector<64x1xf32> to vector<64x16xf32>
    %5 = arith.addf %2, %4 : vector<64x16xf32>
    %cst_5 = arith.constant 0.000000e+00 : f32
    %6 = vector.broadcast %cst_5 : f32 to vector<64x16xf32>
    %7 = arith.maximumf %5, %6 : vector<64x16xf32>
    %8 = arith.truncf %7 : vector<64x16xf32> to vector<64x16xbf16>
    %c0_6 = arith.constant 0 : index
    %c0_7 = arith.constant 0 : index
    %9 = vector.load %arg4[%c0_6, %c0_7] : memref<64x16xbf16, #tpu.memory_space<vmem>>, vector<64x16xbf16>
    tpu.vector_store %arg4[%c0_6, %c0_7], %8 {strides = array<i32>} : memref<64x16xbf16, #tpu.memory_space<vmem>>, vector<64x16xbf16>,
    return
  }
  func.func @transform_0(%arg0: i32) -> (i32, i32) {
    %c0_i32 = arith.constant 0 : i32
    %c0_i32_0 = arith.constant 0 : i32
    return %c0_i32, %arg0 : i32, i32
  }
  func.func @transform_1(%arg0: i32) -> (i32, i32) {
    %c0_i32 = arith.constant 0 : i32
    %c0_i32_0 = arith.constant 0 : i32
    %c0_i32_1 = arith.constant 0 : i32
    return %c0_i32, %c0_i32_0 : i32, i32
  }
  func.func @transform_2(%arg0: i32) -> (i32, i32) {
    %c0_i32 = arith.constant 0 : i32
    %c0_i32_0 = arith.constant 0 : i32
    %c0_i32_1 = arith.constant 0 : i32
    return %c0_i32, %c0_i32_0 : i32, i32
  }
  func.func @transform_3(%arg0: i32) -> (i32, i32) {
    %c0_i32 = arith.constant 0 : i32
    %c0_i32_0 = arith.constant 0 : i32
    return %c0_i32, %arg0 : i32, i32
  }
}

module attributes {stable_mosaic.version = 11 : i64} {
  func.func @_mm_bias_kernel(%arg0: i32, %arg1: memref<96x128xbf16, #tpu.memory_space<vmem>>, %arg2: memref<32x96xbf16, #tpu.memory_space<vmem>>, %arg3: memref<32x1xf32, #tpu.memory_space<vmem>>, %arg4: memref<32x128xf32, #tpu.memory_space<vmem>>) attributes {dimension_semantics = [#tpu.dimension_semantics<parallel>], iteration_bounds = array<i64: 1>, scalar_prefetch = 0 : i64, scratch_operands = 0 : i64, tpu.core_type = #tpu.core_type<tc>, window_params = [{transform_indices = @transform_0, window_bounds = array<i64: 96, 128>}, {pipeline_mode = #tpu.pipeline_mode<synchronous>, transform_indices = @transform_1, window_bounds = array<i64: 32, 96>}, {pipeline_mode = #tpu.pipeline_mode<synchronous>, transform_indices = @transform_2, window_bounds = array<i64: 32, 1>}, {transform_indices = @transform_3, window_bounds = array<i64: 32, 128>}]} {
    %c0 = arith.constant 0 : index
    %c0_0 = arith.constant 0 : index
    %0 = vector.load %arg2[%c0, %c0_0] : memref<32x96xbf16, #tpu.memory_space<vmem>>, vector<32x96xbf16>
    %c0_1 = arith.constant 0 : index
    %c0_2 = arith.constant 0 : index
    %1 = vector.load %arg1[%c0_1, %c0_2] : memref<96x128xbf16, #tpu.memory_space<vmem>>, vector<96x128xbf16>
    %cst = arith.constant dense<0.000000e+00> : vector<32x128xf32>
    %2 = tpu.matmul %0, %1, %cst {dimension_numbers = #tpu.dot_dimension_numbers<[1], [0], [0], [1], [0, 0, 1, 1], [], []>} : vector<32x96xbf16>, vector<96x128xbf16>, vector<32x128xf32> -> vector<32x128xf32>
    %c0_3 = arith.constant 0 : index
    %c0_4 = arith.constant 0 : index
    %3 = vector.load %arg3[%c0_3, %c0_4] : memref<32x1xf32, #tpu.memory_space<vmem>>, vector<32x1xf32>
    %4 = vector.broadcast %3 : vector<32x1xf32> to vector<32x128xf32>
    %5 = arith.addf %2, %4 : vector<32x128xf32>
    %cst_5 = arith.constant 0.000000e+00 : f32
    %6 = vector.broadcast %cst_5 : f32 to vector<32x128xf32>
    %7 = arith.maximumf %5, %6 : vector<32x128xf32>
    %c0_6 = arith.constant 0 : index
    %c0_7 = arith.constant 0 : index
    %8 = vector.load %arg4[%c0_6, %c0_7] : memref<32x128xf32, #tpu.memory_space<vmem>>, vector<32x128xf32>
    tpu.vector_store %arg4[%c0_6, %c0_7], %7 {strides = array<i32>} : memref<32x128xf32, #tpu.memory_space<vmem>>, vector<32x128xf32>,
    return
  }
  func.func @transform_0(%arg0: i32) -> (i32, i32) {
    %c0_i32 = arith.constant 0 : i32
    %c0_i32_0 = arith.constant 0 : i32
    return %c0_i32, %arg0 : i32, i32
  }
  func.func @transform_1(%arg0: i32) -> (i32, i32) {
    %c0_i32 = arith.constant 0 : i32
    %c0_i32_0 = arith.constant 0 : i32
    %c0_i32_1 = arith.constant 0 : i32
    return %c0_i32, %c0_i32_0 : i32, i32
  }
  func.func @transform_2(%arg0: i32) -> (i32, i32) {
    %c0_i32 = arith.constant 0 : i32
    %c0_i32_0 = arith.constant 0 : i32
    %c0_i32_1 = arith.constant 0 : i32
    return %c0_i32, %c0_i32_0 : i32, i32
  }
  func.func @transform_3(%arg0: i32) -> (i32, i32) {
    %c0_i32 = arith.constant 0 : i32
    %c0_i32_0 = arith.constant 0 : i32
    return %c0_i32, %arg0 : i32, i32
  }
}

</mosaic_0001>

<bundles_post_ra>
// kernel: hourglass_forward.6
= control target key start
LH: loop header
LB: loop body
LE: loop exit
PB: predicated region body
PF: predicated region fallthrough
CT: control target
= control target key end

     0   :  { %v174_v0 = vmov 0.0   ;;  %vm175_vm0 = vmmov 0   ;;  %v176_v2 = vmov 0   ;;  %vm78_vm1 = vcmask 916480   ;;  %s227_s0 = inlined_call_operand.vmem [shape: bf16[112,128], index: 0, kind: input, shape index: {}]   ;;  %s228_s2 = inlined_call_operand.vmem [shape: f32[8,1], index: 2, kind: input, shape index: {}]   ;;  %s229_s1 = inlined_call_operand.vmem [shape: bf16[8,112], index: 1, kind: input, shape index: {}]   ;;  %s230_s3 = inlined_call_operand.vmem [shape: bf16[8,128], index: 3, kind: output, shape index: {}]  }
   0x1   :  { %145 = vmatprep.subr.bf16.mxu0 %v174_v0  ;;  %v167_v1 = vld [vmem:[%s227_s0 + $0x30] sm:$0xff]   ;;  %159 = vmatprep.mubr.msk.bf16.mxu0 %vm175_vm0, %v174_v0  ;;  %v168_v3 = vld [vmem:[%s227_s0 + $0x28] sm:$0xff]   ;;  %v169_v4 = vld [vmem:[%s227_s0 + $0x20] sm:$0xff]  }
   0x2   :  { %166 = vset.pattern.permute.xlu0 %v176_v2  ;;  %146 = vmatpush3.bf16.msra.mxu0 %v167_v1  ;;  %v30_v5 = vld [vmem:[%s228_s2] sm:$0xff]  ;;  %v170_v6 = vld [vmem:[%s227_s0 + $0x18] sm:$0xff]   ;;  %v171_v7 = vld [vmem:[%s227_s0 + $0x10] sm:$0xff]  }
   0x3   :  { %147 = vmatprep.subr.bf16.mxu0 %v174_v0  ;;  %33 = vperm.xlu0 %166, %v30_v5   ;;  %v172_v8 = vld [vmem:[%s227_s0 + $0x8] sm:$0xff]   ;;  %v173_v9 = vld [vmem:[%s227_s0] sm:$0xff]  }
   0x4   :  { %v15_v10 = vld [vmem:[%s229_s1] sm:$0xf] }
   0x6   :  { %148 = vmatpush3.bf16.msra.mxu0 %v168_v3 }
   0x7   :  { %149 = vmatprep.subr.bf16.mxu0 %v174_v0 }
   0xa   :  { %150 = vmatpush3.bf16.msra.mxu0 %v169_v4 }
   0xb   :  { %151 = vmatprep.subr.bf16.mxu0 %v174_v0 }
   0xe   :  { %152 = vmatpush3.bf16.msra.mxu0 %v170_v6 }
   0xf   :  { %153 = vmatprep.subr.bf16.mxu0 %v174_v0 }
  0x12   :  { %154 = vmatpush3.bf16.msra.mxu0 %v171_v7 }
  0x13   :  { %155 = vmatprep.subr.bf16.mxu0 %v174_v0 }
  0x16   :  { %156 = vmatpush3.bf16.msra.mxu0 %v172_v8 }
  0x17   :  { %157 = vmatprep.subr.bf16.mxu0 %v174_v0 }
  0x1a   :  { %158 = vmatpush3.bf16.msra.mxu0 %v173_v9 }
  0x1d   :  { %160 = vmatmul.mubr.msk.bf16.vlgmr.msra.gmra.mxu0 %vm78_vm1, %v15_v10 }
  0x7e   :  { %v34_v11 = vpop.permute.xlu0 %33 }
  0xdd   :  { %v116_v12 = vpop.f32.mrf.mxu0 }
  0xde   :  { %v117_v13 = vadd.f32 %v116_v12, %v34_v11 }
  0xdf   :  { %v161_v14 = vpop.f32.mrf.mxu0 }
  0xe0   :  { %v122_v15 = vmax.f32 %v117_v13, 0.0 }
  0xe1   :  { %v119_v16 = vpop.f32.mrf.mxu0 }
  0xe2   :  { %v123_v17 = vpack.c.bf16 %v122_v15, %v122_v15 }
  0xe3   :  { %v162_v18 = vpop.f32.mrf.mxu0 }
  0xe4   :  { %124 = vst [vmem:[%s230_s3] sm:$0xf] %v123_v17 }

// kernel: hourglass_forward.7
= control target key start
LH: loop header
LB: loop body
LE: loop exit
PB: predicated region body
PF: predicated region fallthrough
CT: control target
= control target key end

     0   :  { %v226_v0 = vmov 0   ;;  %vm140_vm0 = vcmask 785408   ;;  %s298_s0 = inlined_call_operand.vmem [shape: bf16[224,128], index: 0, kind: input, shape index: {}]   ;;  %s299_s1 = inlined_call_operand.vmem [shape: bf16[8,224], index: 1, kind: input, shape index: {}]   ;;  %s300_s2 = inlined_call_operand.vmem [shape: f32[8,1], index: 2, kind: input, shape index: {}]   ;;  %s301_s3 = inlined_call_operand.vmem [shape: bf16[8,128], index: 3, kind: output, shape index: {}]  }
   0x1   :  { %144 = vmatprep.subr.bf16.mxu0 %v226_v0  ;;  %v210_v1 = vld [vmem:[%s298_s0 + $0x38] sm:$0xff]   ;;  %209 = vset.pattern.permute.xlu0 %v226_v0  ;;  %v211_v2 = vld [vmem:[%s298_s0 + $0x30] sm:$0xff]   ;;  %v212_v3 = vld [vmem:[%s298_s0 + $0x28] sm:$0xff]  }
   0x2   :  { %145 = vmatpush1.bf16.msra.mxu0 %v210_v1  ;;  %v213_v4 = vld [vmem:[%s298_s0 + $0x20] sm:$0xff]   ;;  %v214_v5 = vld [vmem:[%s298_s0 + $0x18] sm:$0xff]   ;;  %v215_v9 = vld [vmem:[%s298_s0 + $0x10] sm:$0xff]  }
   0x3   :  { %146 = vmatprep.subr.bf16.mxu0 %v226_v0  ;;  %v15_v6 = vld [vmem:[%s299_s1] sm:$0xff]  ;;  %v216_v10 = vld [vmem:[%s298_s0 + $0x8] sm:$0xff]   ;;  %v220_v14 = vld [vmem:[%s298_s0 + $0x58] sm:$0xff]  }
   0x4   :  { %v44_v7 = vld [vmem:[%s300_s2] sm:$0xff]  ;;  %v192_v8 = vcombine.high %v15_v6, %v15_v6  ;;  %v218_v12 = vld [vmem:[%s298_s0 + $0x68] sm:$0xff]   ;;  %v221_v15 = vld [vmem:[%s298_s0 + $0x50] sm:$0xff]   ;;  %v191_v18 = vcombine.low %v15_v6, %v15_v6 }
   0x5   :  { %47 = vperm.xlu0 %209, %v44_v7   ;;  %v217_v11 = vld [vmem:[%s298_s0] sm:$0xff]   ;;  %v222_v16 = vld [vmem:[%s298_s0 + $0x48] sm:$0xff]  }
   0x6   :  { %147 = vmatpush1.bf16.msra.mxu0 %v211_v2  ;;  %207 = vmatprep.mubr.msk.bf16.mxu0 %vm140_vm0, %v192_v8  ;;  %v219_v13 = vld [vmem:[%s298_s0 + $0x60] sm:$0xff]  }
   0x7   :  { %148 = vmatprep.subr.bf16.mxu0 %v226_v0  ;;  %v223_v17 = vld [vmem:[%s298_s0 + $0x40] sm:$0xff]  }
   0xa   :  { %149 = vmatpush1.bf16.msra.mxu0 %v212_v3 }
   0xb   :  { %150 = vmatprep.subr.bf16.mxu0 %v226_v0 }
   0xe   :  { %151 = vmatpush1.bf16.msra.mxu0 %v213_v4 }
   0xf   :  { %152 = vmatprep.subr.bf16.mxu0 %v226_v0 }
  0x12   :  { %153 = vmatpush1.bf16.msra.mxu0 %v214_v5 }
  0x13   :  { %154 = vmatprep.subr.bf16.mxu0 %v226_v0 }
  0x16   :  { %155 = vmatpush1.bf16.msra.mxu0 %v215_v9 }
  0x17   :  { %156 = vmatprep.subr.bf16.mxu0 %v226_v0 }
  0x1a   :  { %157 = vmatpush1.bf16.msra.mxu0 %v216_v10 }
  0x1b   :  { %158 = vmatprep.subr.bf16.mxu0 %v226_v0 }
  0x1e   :  { %159 = vmatpush1.bf16.msra.mxu0 %v217_v11 }
  0x1f   :  { %164 = vmatprep.subr.bf16.mxu0 %v226_v0 }
  0x22   :  { %165 = vmatpush2.bf16.msra.mxu0 %v218_v12 }
  0x23   :  { %166 = vmatprep.subr.bf16.mxu0 %v226_v0 }
  0x26   :  { %167 = vmatpush2.bf16.msra.mxu0 %v219_v13 }
  0x27   :  { %168 = vmatprep.subr.bf16.mxu0 %v226_v0 }
  0x2a   :  { %169 = vmatpush2.bf16.msra.mxu0 %v220_v14 }
  0x2b   :  { %170 = vmatprep.subr.bf16.mxu0 %v226_v0 }
  0x2e   :  { %171 = vmatpush2.bf16.msra.mxu0 %v221_v15 }
  0x2f   :  { %172 = vmatprep.subr.bf16.mxu0 %v226_v0 }
  0x32   :  { %173 = vmatpush2.bf16.msra.mxu0 %v222_v16 }
  0x33   :  { %174 = vmatprep.subr.bf16.mxu0 %v226_v0 }
  0x36   :  { %175 = vmatpush2.bf16.msra.mxu0 %v223_v17 }
  0x39   :  { %177 = vmatmul.mubr.bf16.vlgmr.msra.gmra.mxu0 %v191_v18 }
  0x80   :  { %v48_v19 = vpop.permute.xlu0 %47 }
  0xf9   :  { %v178_v20 = vpop.f32.mrf.mxu0 }
  0xfa   :  { %v179_v21 = vadd.f32 %v178_v20, %v48_v19 }
  0xfb   :  { %v180_v22 = vpop.f32.mrf.mxu0 }
  0xfc   :  { %v184_v23 = vmax.f32 %v179_v21, 0.0 }
  0xfd   :  { %v181_v24 = vpop.f32.mrf.mxu0 }
  0xfe   :  { %v185_v25 = vpack.c.bf16 %v184_v23, %v184_v23 }
  0xff   :  { %v182_v26 = vpop.f32.mrf.mxu0 }
 0x100   :  { %186 = vst [vmem:[%s301_s3] sm:$0xf] %v185_v25 }

// kernel: hourglass_forward.8
= control target key start
LH: loop header
LB: loop body
LE: loop exit
PB: predicated region body
PF: predicated region fallthrough
CT: control target
= control target key end

     0   :  { %v252_v0 = vmov 0   ;;  %vm150_vm0 = vcmask 785408   ;;  %vm205_vm1 = vcmask 125952   ;;  %s333_s0 = inlined_call_operand.vmem [shape: bf16[224,16], index: 0, kind: input, shape index: {}]   ;;  %s334_s1 = inlined_call_operand.vmem [shape: bf16[16,224], index: 1, kind: input, shape index: {}]   ;;  %s335_s2 = inlined_call_operand.vmem [shape: f32[16,1], index: 2, kind: input, shape index: {}]   ;;  %s336_s3 = inlined_call_operand.vmem [shape: bf16[16,16], index: 3, kind: output, shape index: {}]  }
   0x1   :  { %154 = vmatprep.subr.bf16.mxu0 %v252_v0  ;;  %v235_v1 = vld [vmem:[%s333_s0 + $0x38] sm:$0xff]   ;;  %234 = vset.pattern.permute.xlu0 %v252_v0  ;;  %v236_v2 = vld [vmem:[%s333_s0 + $0x30] sm:$0xff]   ;;  %v237_v3 = vld [vmem:[%s333_s0 + $0x28] sm:$0xff]  }
   0x2   :  { %155 = vmatpush1.bf16.msra.mxu0 %v235_v1  ;;  %v238_v4 = vld [vmem:[%s333_s0 + $0x20] sm:$0xff]   ;;  %v239_v5 = vld [vmem:[%s333_s0 + $0x18] sm:$0xff]   ;;  %v46_v8 = vld [vmem:[%s335_s2 + $0x8] sm:$0xff] }
   0x3   :  { %156 = vmatprep.subr.bf16.mxu0 %v252_v0  ;;  %v251_v6 = vld [vmem:[%s334_s1 + $0x4] ss:$8 sps:$4 sm:$0xff]   ;;  %v240_v9 = vld [vmem:[%s333_s0 + $0x10] sm:$0xff]   ;;  %v245_v14 = vld [vmem:[%s333_s0 + $0x58] sm:$0xff]  }
   0x4   :  { %v45_v7 = vld [vmem:[%s335_s2] sm:$0xff]  ;;  %228 = vmatprep.mubr.msk.bf16.mxu0 %vm150_vm0, %v251_v6  ;;  %v241_v10 = vld [vmem:[%s333_s0 + $0x8] sm:$0xff]   ;;  %v246_v15 = vld [vmem:[%s333_s0 + $0x50] sm:$0xff]  }
   0x5   :  { %49 = vperm.xlu0 %234, %v45_v7   ;;  %v242_v11 = vld [vmem:[%s333_s0] sm:$0xff]   ;;  %v243_v12 = vld [vmem:[%s333_s0 + $0x68] sm:$0xff]  }
   0x6   :  { %157 = vmatpush1.bf16.msra.mxu0 %v236_v2  ;;  %v244_v13 = vld [vmem:[%s333_s0 + $0x60] sm:$0xff]   ;;  %v247_v16 = vld [vmem:[%s333_s0 + $0x48] sm:$0xff]  }
   0x7   :  { %158 = vmatprep.subr.bf16.mxu0 %v252_v0  ;;  %v248_v17 = vld [vmem:[%s333_s0 + $0x40] sm:$0xff]  }
   0x8   :  { %v249_v18 = vld [vmem:[%s334_s1] ss:$8 sps:$4 sm:$0xff]  }
   0x9   :  { %54 = vperm.xlu0 %234, %v46_v8  }
   0xa   :  { %159 = vmatpush1.bf16.msra.mxu0 %v237_v3 }
   0xb   :  { %160 = vmatprep.subr.bf16.mxu0 %v252_v0 }
   0xe   :  { %161 = vmatpush1.bf16.msra.mxu0 %v238_v4 }
   0xf   :  { %162 = vmatprep.subr.bf16.mxu0 %v252_v0 }
  0x12   :  { %163 = vmatpush1.bf16.msra.mxu0 %v239_v5 }
  0x13   :  { %164 = vmatprep.subr.bf16.mxu0 %v252_v0 }
  0x16   :  { %165 = vmatpush1.bf16.msra.mxu0 %v240_v9 }
  0x17   :  { %166 = vmatprep.subr.bf16.mxu0 %v252_v0 }
  0x1a   :  { %167 = vmatpush1.bf16.msra.mxu0 %v241_v10 }
  0x1b   :  { %168 = vmatprep.subr.bf16.mxu0 %v252_v0 }
  0x1e   :  { %169 = vmatpush1.bf16.msra.mxu0 %v242_v11 }
  0x1f   :  { %174 = vmatprep.subr.bf16.mxu0 %v252_v0 }
  0x22   :  { %175 = vmatpush2.bf16.msra.mxu0 %v243_v12 }
  0x23   :  { %176 = vmatprep.subr.bf16.mxu0 %v252_v0 }
  0x26   :  { %177 = vmatpush2.bf16.msra.mxu0 %v244_v13 }
  0x27   :  { %178 = vmatprep.subr.bf16.mxu0 %v252_v0 }
  0x2a   :  { %179 = vmatpush2.bf16.msra.mxu0 %v245_v14 }
  0x2b   :  { %180 = vmatprep.subr.bf16.mxu0 %v252_v0 }
  0x2e   :  { %181 = vmatpush2.bf16.msra.mxu0 %v246_v15 }
  0x2f   :  { %182 = vmatprep.subr.bf16.mxu0 %v252_v0 }
  0x32   :  { %183 = vmatpush2.bf16.msra.mxu0 %v247_v16 }
  0x33   :  { %184 = vmatprep.subr.bf16.mxu0 %v252_v0 }
  0x36   :  { %185 = vmatpush2.bf16.msra.mxu0 %v248_v17 }
  0x39   :  { %187 = vmatmul.mubr.bf16.vlgmr.msra.gmra.mxu0 %v249_v18 }
  0x80   :  { %v50_v19 = vpop.permute.xlu0 %49 }
  0x84   :  { %v55_v24 = vpop.permute.xlu0 %54 }
  0xf9   :  { %v188_v20 = vpop.f32.mrf.mxu0 }
  0xfa   :  { %v189_v21 = vadd.f32 %v188_v20, %v50_v19 }
  0xfb   :  { %v190_v22 = vpop.f32.mrf.mxu0 }
  0xfc   :  { %v195_v23 = vmax.f32 %v189_v21, 0.0 }
  0xfd   :  { %v191_v25 = vpop.f32.mrf.mxu0 }
  0xfe   :  { %v231_v26 = vpack.c.bf16 %v195_v23, %v195_v23  ;;  %v192_v27 = vadd.f32 %v191_v25, %v55_v24 }
  0xff   :  { %v193_v28 = vpop.f32.mrf.mxu0 }
 0x100   :  { %206 = vst.msk [vmem:[%s336_s3] sm:$0xf] %vm205_vm1, %v231_v26  ;;  %v196_v29 = vmax.f32 %v192_v27, 0.0 }
 0x102   :  { %v232_v30 = vpack.c.bf16 %v196_v29, %v196_v29 }
 0x104   :  { %207 = vst.msk [vmem:[%s336_s3 + $0x4] sm:$0xf] %vm205_vm1, %v232_v30 }

// kernel: hourglass_forward.9
= control target key start
LH: loop header
LB: loop body
LE: loop exit
PB: predicated region body
PF: predicated region fallthrough
CT: control target
= control target key end

     0   :  { %v462_v0 = vmov 0   ;;  %vm266_vm0 = vcmask 392192   ;;  %vm362_vm1 = vcmask 125952   ;;  %s600_s0 = inlined_call_operand.vmem [shape: bf16[432,16], index: 0, kind: input, shape index: {}]   ;;  %s601_s1 = inlined_call_operand.vmem [shape: bf16[16,432], index: 1, kind: input, shape index: {}]   ;;  %s602_s2 = inlined_call_operand.vmem [shape: f32[16,1], index: 2, kind: input, shape index: {}]   ;;  %s603_s3 = inlined_call_operand.vmem [shape: bf16[16,16], index: 3, kind: output, shape index: {}]  }
   0x1   :  { %311 = vmatprep.subr.bf16.mxu1 %v462_v0  ;;  %v429_v1 = vld [vmem:[%s600_s0 + $0x78] sm:$0xff]   ;;  %428 = vset.pattern.permute.xlu0 %v462_v0  ;;  %v432_v4 = vld [vmem:[%s600_s0 + $0x70] sm:$0xff]   ;;  %v435_v7 = vld [vmem:[%s600_s0 + $0x68] sm:$0xff]  }
   0x2   :  { %v430_v2 = vld [vmem:[%s600_s0 + $0xb8] sm:$0xff]   ;;  %405 = vmatprep.subr.bf16.mxu0 %v429_v1  ;;  %v433_v5 = vld [vmem:[%s600_s0 + $0xb0] sm:$0xff]   ;;  %v436_v8 = vld [vmem:[%s600_s0 + $0xa8] sm:$0xff]  }
   0x3   :  { %v431_v3 = vld [vmem:[%s600_s0 + $0x38] sm:$0xff]   ;;  %312 = vmatpush1.bf16.msra.mxu1 %v430_v2  ;;  %v434_v6 = vld [vmem:[%s600_s0 + $0x30] sm:$0xff]   ;;  %v437_v9 = vld [vmem:[%s600_s0 + $0x28] sm:$0xff]  }
   0x4   :  { %406 = vmatpush3.bf16.msra.mxu0 %v431_v3  ;;  %313 = vmatprep.subr.bf16.mxu1 %v462_v0  ;;  %v438_v10 = vld [vmem:[%s600_s0 + $0x60] sm:$0xff]   ;;  %v441_v13 = vld [vmem:[%s600_s0 + $0x58] sm:$0xff]   ;;  %v444_v16 = vld [vmem:[%s600_s0 + $0x50] sm:$0xff]  }
   0x5   :  { %407 = vmatprep.subr.bf16.mxu0 %v432_v4  ;;  %v439_v11 = vld [vmem:[%s600_s0 + $0xa0] sm:$0xff]   ;;  %v442_v14 = vld [vmem:[%s600_s0 + $0x98] sm:$0xff]   ;;  %v445_v17 = vld [vmem:[%s600_s0 + $0x90] sm:$0xff]  }
   0x6   :  { %v440_v12 = vld [vmem:[%s600_s0 + $0x20] sm:$0xff]   ;;  %v443_v15 = vld [vmem:[%s600_s0 + $0x18] sm:$0xff]   ;;  %v446_v18 = vld [vmem:[%s600_s0 + $0x10] sm:$0xff]  }
   0x7   :  { %314 = vmatpush1.bf16.msra.mxu1 %v433_v5  ;;  %v447_v19 = vld [vmem:[%s600_s0 + $0x48] sm:$0xff]   ;;  %v450_v22 = vld [vmem:[%s600_s0 + $0x40] sm:$0xff]   ;;  %v456_v29 = vld [vmem:[%s600_s0 + $0xd0] sm:$0xff]  }
   0x8   :  { %408 = vmatpush3.bf16.msra.mxu0 %v434_v6  ;;  %315 = vmatprep.subr.bf16.mxu1 %v462_v0  ;;  %v448_v20 = vld [vmem:[%s600_s0 + $0x88] sm:$0xff]   ;;  %v455_v23 = vld [vmem:[%s601_s1 + $0x4] ss:$16 sps:$4 sm:$0xff]   ;;  %v453_v28 = vld [vmem:[%s601_s1] ss:$16 sps:$4 sm:$0xff]  }
   0x9   :  { %409 = vmatprep.subr.bf16.mxu0 %v435_v7  ;;  %v449_v21 = vld [vmem:[%s600_s0 + $0x8] sm:$0xff]   ;;  %v451_v24 = vld [vmem:[%s600_s0 + $0x80] sm:$0xff]   ;;  %302 = vmatprep.mubr.bf16.mxu0 %v455_v23 }
   0xa   :  { %v452_v25 = vld [vmem:[%s600_s0] sm:$0xff]   ;;  %v461_v26 = vld [vmem:[%s601_s1 + $0xc] ss:$16 sps:$4 sm:$0xff]   ;;  %v459_v33 = vld [vmem:[%s601_s1 + $0x8] ss:$16 sps:$4 sm:$0xff]  }
   0xb   :  { %316 = vmatpush1.bf16.msra.mxu1 %v436_v8  ;;  %v73_v27 = vld [vmem:[%s602_s2] sm:$0xff]  ;;  %400 = vmatprep.mubr.msk.bf16.mxu1 %vm266_vm0, %v461_v26  ;;  %v74_v30 = vld [vmem:[%s602_s2 + $0x8] sm:$0xff] }
   0xc   :  { %410 = vmatpush3.bf16.msra.mxu0 %v437_v9  ;;  %317 = vmatprep.subr.bf16.mxu1 %v462_v0  ;;  %v457_v31 = vld [vmem:[%s600_s0 + $0xc8] sm:$0xff]   ;;  %v458_v32 = vld [vmem:[%s600_s0 + $0xc0] sm:$0xff]  }
   0xd   :  { %411 = vmatprep.subr.bf16.mxu0 %v438_v10  ;;  %77 = vperm.xlu0 %428, %v73_v27  }
   0xf   :  { %318 = vmatpush1.bf16.msra.mxu1 %v439_v11 }
  0x10   :  { %412 = vmatpush3.bf16.msra.mxu0 %v440_v12  ;;  %319 = vmatprep.subr.bf16.mxu1 %v462_v0 }
  0x11   :  { %413 = vmatprep.subr.bf16.mxu0 %v441_v13  ;;  %82 = vperm.xlu0 %428, %v74_v30  }
  0x13   :  { %320 = vmatpush1.bf16.msra.mxu1 %v442_v14 }
  0x14   :  { %414 = vmatpush3.bf16.msra.mxu0 %v443_v15  ;;  %321 = vmatprep.subr.bf16.mxu1 %v462_v0 }
  0x15   :  { %415 = vmatprep.subr.bf16.mxu0 %v444_v16 }
  0x17   :  { %322 = vmatpush1.bf16.msra.mxu1 %v445_v17 }
  0x18   :  { %416 = vmatpush3.bf16.msra.mxu0 %v446_v18  ;;  %323 = vmatprep.subr.bf16.mxu1 %v462_v0 }
  0x19   :  { %417 = vmatprep.subr.bf16.mxu0 %v447_v19 }
  0x1b   :  { %324 = vmatpush1.bf16.msra.mxu1 %v448_v20 }
  0x1c   :  { %418 = vmatpush3.bf16.msra.mxu0 %v449_v21  ;;  %325 = vmatprep.subr.bf16.mxu1 %v462_v0 }
  0x1d   :  { %419 = vmatprep.subr.bf16.mxu0 %v450_v22 }
  0x1f   :  { %326 = vmatpush1.bf16.msra.mxu1 %v451_v24 }
  0x20   :  { %420 = vmatpush3.bf16.msra.mxu0 %v452_v25  ;;  %337 = vmatprep.subr.bf16.mxu1 %v462_v0 }
  0x23   :  { %303 = vmatmul.mubr.bf16.vlgmr.msra.gmra.mxu0 %v453_v28  ;;  %338 = vmatpush2.bf16.msra.mxu1 %v456_v29 }
  0x24   :  { %339 = vmatprep.subr.bf16.mxu1 %v462_v0 }
  0x27   :  { %340 = vmatpush2.bf16.msra.mxu1 %v457_v31 }
  0x28   :  { %341 = vmatprep.subr.bf16.mxu1 %v462_v0 }
  0x2b   :  { %342 = vmatpush2.bf16.msra.mxu1 %v458_v32 }
  0x2e   :  { %344 = vmatmul.mubr.bf16.vlgmr.msra.gmra.mxu1 %v459_v33 }
  0x88   :  { %v78_v37 = vpop.permute.xlu0 %77 }
  0x8c   :  { %v83_v42 = vpop.permute.xlu0 %82 }
  0xe3   :  { %v421_v34 = vpop.f32.mrf.mxu0 }
  0xe5   :  { %v422_v35 = vpop.f32.mrf.mxu0 }
  0xe6   :  { %v423_v38 = vadd.f32 %v422_v35, %v421_v34 }
  0xe7   :  { %v424_v36 = vpop.f32.mrf.mxu0 }
  0xe8   :  { %v305_v40 = vadd.f32 %v423_v38, %v78_v37 }
  0xe9   :  { %v425_v39 = vpop.f32.mrf.mxu0 }
  0xea   :  { %v426_v41 = vadd.f32 %v425_v39, %v424_v36 }
  0xec   :  { %v308_v46 = vadd.f32 %v426_v41, %v83_v42 }
  0xee   :  { %v345_v43 = vpop.f32.mrf.mxu1 }
  0xef   :  { %v346_v44 = vadd.f32 %v345_v43, %v305_v40 }
  0xf0   :  { %v347_v45 = vpop.f32.mrf.mxu1 }
  0xf1   :  { %v352_v47 = vmax.f32 %v346_v44, 0.0 }
  0xf2   :  { %v348_v48 = vpop.f32.mrf.mxu1 }
  0xf3   :  { %v403_v49 = vpack.c.bf16 %v352_v47, %v352_v47  ;;  %v349_v50 = vadd.f32 %v348_v48, %v308_v46 }
  0xf4   :  { %v350_v51 = vpop.f32.mrf.mxu1 }
  0xf5   :  { %363 = vst.msk [vmem:[%s603_s3] sm:$0xf] %vm362_vm1, %v403_v49  ;;  %v353_v52 = vmax.f32 %v349_v50, 0.0 }
  0xf7   :  { %v404_v53 = vpack.c.bf16 %v353_v52, %v353_v52 }
  0xf9   :  { %364 = vst.msk [vmem:[%s603_s3 + $0x4] sm:$0xf] %vm362_vm1, %v404_v53 }

// kernel: hourglass_forward.10
= control target key start
LH: loop header
LB: loop body
LE: loop exit
PB: predicated region body
PF: predicated region fallthrough
CT: control target
= control target key end

     0   :  { %v425_v0 = vmov 0   ;;  %vm203_vm0 = vcmask 523264   ;;  %vm321_vm1 = vcmask 125952   ;;  %s592_s0 = inlined_call_operand.vmem [shape: bf16[192,16], index: 0, kind: input, shape index: {}]   ;;  %s593_s1 = inlined_call_operand.vmem [shape: bf16[64,192], index: 1, kind: input, shape index: {}]   ;;  %s594_s2 = inlined_call_operand.vmem [shape: f32[64,1], index: 2, kind: input, shape index: {}]   ;;  %s595_s3 = inlined_call_operand.vmem [shape: bf16[64,16], index: 3, kind: output, shape index: {}]  }
   0x1   :  { %216 = vmatprep.subr.bf16.mxu0 %v425_v0  ;;  %374 = vmatprep.subr.bf16.mxu1 %v425_v0  ;;  %v401_v1 = vld [vmem:[%s592_s0 + $0x38] sm:$0xff]   ;;  %v402_v2 = vld [vmem:[%s592_s0 + $0x30] sm:$0xff]   ;;  %v403_v3 = vld [vmem:[%s592_s0 + $0x28] sm:$0xff]  }
   0x2   :  { %400 = vset.pattern.permute.xlu1 %v425_v0  ;;  %399 = vset.pattern.permute.xlu0 %v425_v0  ;;  %v404_v4 = vld [vmem:[%s592_s0 + $0x20] sm:$0xff]   ;;  %v405_v6 = vld [vmem:[%s592_s0 + $0x18] sm:$0xff]   ;;  %v49_v8 = vld [vmem:[%s594_s2 + $0x10] sm:$0xff] }
   0x3   :  { %217 = vmatpush1.bf16.msra.mxu0 %v401_v1  ;;  %386 = vmatpush1.bf16.msra.mxu1 %v401_v1  ;;  %v415_v5 = vld [vmem:[%s593_s1 + $0x4] ss:$8 sps:$4 sm:$0xff]   ;;  %v406_v10 = vld [vmem:[%s592_s0 + $0x10] sm:$0xff]   ;;  %v50_v11 = vld [vmem:[%s594_s2 + $0x18] sm:$0xff] }
   0x4   :  { %218 = vmatprep.subr.bf16.mxu0 %v425_v0  ;;  %375 = vmatprep.subr.bf16.mxu1 %v425_v0  ;;  %v418_v7 = vld [vmem:[%s593_s1 + $0x24] ss:$8 sps:$4 sm:$0xff]   ;;  %v54_v17 = vld [vmem:[%s594_s2 + $0x38] sm:$0xff]  ;;  %v53_v18 = vld [vmem:[%s594_s2 + $0x30] sm:$0xff] }
   0x5   :  { %354 = vmatprep.mubr.msk.bf16.mxu0 %vm203_vm0, %v415_v5  ;;  %356 = vmatprep.mubr.msk.bf16.mxu1 %vm203_vm0, %v418_v7  ;;  %v47_v9 = vld [vmem:[%s594_s2] sm:$0xff]  ;;  %v48_v12 = vld [vmem:[%s594_s2 + $0x8] sm:$0xff]  ;;  %v409_v19 = vld [vmem:[%s592_s0 + $0x58] sm:$0xff]  }
   0x6   :  { %67 = vperm.xlu1 %400, %v49_v8   ;;  %57 = vperm.xlu0 %399, %v47_v9   ;;  %v407_v13 = vld [vmem:[%s592_s0 + $0x8] sm:$0xff]   ;;  %v51_v15 = vld [vmem:[%s594_s2 + $0x20] sm:$0xff]  ;;  %v410_v20 = vld [vmem:[%s592_s0 + $0x50] sm:$0xff]  }
   0x7   :  { %219 = vmatpush1.bf16.msra.mxu0 %v402_v2  ;;  %387 = vmatpush1.bf16.msra.mxu1 %v402_v2  ;;  %v52_v14 = vld [vmem:[%s594_s2 + $0x28] sm:$0xff]  ;;  %v408_v16 = vld [vmem:[%s592_s0] sm:$0xff]   ;;  %v419_v25 = vld [vmem:[%s593_s1 + $0x14] ss:$8 sps:$4 sm:$0xff]  }
   0x8   :  { %220 = vmatprep.subr.bf16.mxu0 %v425_v0  ;;  %376 = vmatprep.subr.bf16.mxu1 %v425_v0  ;;  %v411_v21 = vld [vmem:[%s592_s0 + $0x48] sm:$0xff]   ;;  %v412_v22 = vld [vmem:[%s592_s0 + $0x40] sm:$0xff]   ;;  %v421_v26 = vld [vmem:[%s593_s1 + $0x34] ss:$8 sps:$4 sm:$0xff]  }
   0x9   :  { %v413_v23 = vld [vmem:[%s593_s1] ss:$8 sps:$4 sm:$0xff]   ;;  %v423_v27 = vld [vmem:[%s593_s1 + $0x10] ss:$8 sps:$4 sm:$0xff]  }
   0xa   :  { %72 = vperm.xlu1 %400, %v50_v11   ;;  %62 = vperm.xlu0 %399, %v48_v12   ;;  %v416_v24 = vld [vmem:[%s593_s1 + $0x20] ss:$8 sps:$4 sm:$0xff]   ;;  %v424_v28 = vld [vmem:[%s593_s1 + $0x30] ss:$8 sps:$4 sm:$0xff]  }
   0xb   :  { %221 = vmatpush1.bf16.msra.mxu0 %v403_v3  ;;  %388 = vmatpush1.bf16.msra.mxu1 %v403_v3 }
   0xc   :  { %222 = vmatprep.subr.bf16.mxu0 %v425_v0  ;;  %377 = vmatprep.subr.bf16.mxu1 %v425_v0 }
   0xe   :  { %82 = vperm.xlu1 %400, %v52_v14   ;;  %77 = vperm.xlu0 %399, %v51_v15  }
   0xf   :  { %223 = vmatpush1.bf16.msra.mxu0 %v404_v4  ;;  %389 = vmatpush1.bf16.msra.mxu1 %v404_v4 }
  0x10   :  { %224 = vmatprep.subr.bf16.mxu0 %v425_v0  ;;  %378 = vmatprep.subr.bf16.mxu1 %v425_v0 }
  0x12   :  { %92 = vperm.xlu1 %400, %v54_v17   ;;  %87 = vperm.xlu0 %399, %v53_v18  }
  0x13   :  { %225 = vmatpush1.bf16.msra.mxu0 %v405_v6  ;;  %390 = vmatpush1.bf16.msra.mxu1 %v405_v6 }
  0x14   :  { %226 = vmatprep.subr.bf16.mxu0 %v425_v0  ;;  %379 = vmatprep.subr.bf16.mxu1 %v425_v0 }
  0x17   :  { %227 = vmatpush1.bf16.msra.mxu0 %v406_v10  ;;  %391 = vmatpush1.bf16.msra.mxu1 %v406_v10 }
  0x18   :  { %228 = vmatprep.subr.bf16.mxu0 %v425_v0  ;;  %380 = vmatprep.subr.bf16.mxu1 %v425_v0 }
  0x1b   :  { %229 = vmatpush1.bf16.msra.mxu0 %v407_v13  ;;  %392 = vmatpush1.bf16.msra.mxu1 %v407_v13 }
  0x1c   :  { %230 = vmatprep.subr.bf16.mxu0 %v425_v0  ;;  %381 = vmatprep.subr.bf16.mxu1 %v425_v0 }
  0x1f   :  { %231 = vmatpush1.bf16.msra.mxu0 %v408_v16  ;;  %393 = vmatpush1.bf16.msra.mxu1 %v408_v16 }
  0x20   :  { %240 = vmatprep.subr.bf16.mxu0 %v425_v0  ;;  %382 = vmatprep.subr.bf16.mxu1 %v425_v0 }
  0x23   :  { %241 = vmatpush2.bf16.msra.mxu0 %v409_v19  ;;  %394 = vmatpush2.bf16.msra.mxu1 %v409_v19 }
  0x24   :  { %242 = vmatprep.subr.bf16.mxu0 %v425_v0  ;;  %383 = vmatprep.subr.bf16.mxu1 %v425_v0 }
  0x27   :  { %243 = vmatpush2.bf16.msra.mxu0 %v410_v20  ;;  %395 = vmatpush2.bf16.msra.mxu1 %v410_v20 }
  0x28   :  { %244 = vmatprep.subr.bf16.mxu0 %v425_v0  ;;  %384 = vmatprep.subr.bf16.mxu1 %v425_v0 }
  0x2b   :  { %245 = vmatpush2.bf16.msra.mxu0 %v411_v21  ;;  %396 = vmatpush2.bf16.msra.mxu1 %v411_v21 }
  0x2c   :  { %246 = vmatprep.subr.bf16.mxu0 %v425_v0  ;;  %385 = vmatprep.subr.bf16.mxu1 %v425_v0 }
  0x2f   :  { %247 = vmatpush2.bf16.msra.mxu0 %v412_v22  ;;  %397 = vmatpush2.bf16.msra.mxu1 %v412_v22 }
  0x32   :  { %249 = vmatmul.mubr.bf16.vlgmr.msra.gmra.mxu0 %v413_v23  ;;  %265 = vmatmul.mubr.bf16.vlgmr.msra.gmra.mxu1 %v416_v24 }
  0x33   :  { %355 = vmatprep.mubr.msk.bf16.mxu0 %vm203_vm0, %v419_v25  ;;  %357 = vmatprep.mubr.msk.bf16.mxu1 %vm203_vm0, %v421_v26 }
  0x3a   :  { %257 = vmatmul.mubr.bf16.gmra.mxu0 %v423_v27  ;;  %273 = vmatmul.mubr.bf16.gmra.mxu1 %v424_v28 }
  0x81   :  { %v58_v29 = vpop.permute.xlu0 %57  ;;  %v68_v30 = vpop.permute.xlu1 %67 }
  0x85   :  { %v63_v31 = vpop.permute.xlu0 %62  ;;  %v73_v32 = vpop.permute.xlu1 %72 }
  0x89   :  { %v78_v33 = vpop.permute.xlu0 %77  ;;  %v83_v40 = vpop.permute.xlu1 %82 }
  0x8d   :  { %v88_v51 = vpop.permute.xlu0 %87  ;;  %v93_v62 = vpop.permute.xlu1 %92 }
  0xf2   :  { %v250_v34 = vpop.f32.mrf.mxu0  ;;  %v266_v35 = vpop.f32.mrf.mxu1 }
  0xf3   :  { %v251_v36 = vadd.f32 %v250_v34, %v58_v29  ;;  %v267_v37 = vadd.f32 %v266_v35, %v78_v33 }
  0xf4   :  { %v252_v38 = vpop.f32.mrf.mxu0  ;;  %v268_v39 = vpop.f32.mrf.mxu1 }
  0xf5   :  { %v281_v41 = vmax.f32 %v251_v36, 0.0  ;;  %v285_v42 = vmax.f32 %v267_v37, 0.0 }
  0xf6   :  { %v253_v43 = vpop.f32.mrf.mxu0  ;;  %v269_v44 = vpop.f32.mrf.mxu1 }
  0xf7   :  { %v366_v45 = vpack.c.bf16 %v281_v41, %v281_v41  ;;  %v370_v46 = vpack.c.bf16 %v285_v42, %v285_v42  ;;  %v254_v47 = vadd.f32 %v253_v43, %v63_v31  ;;  %v270_v48 = vadd.f32 %v269_v44, %v83_v40 }
  0xf8   :  { %v255_v49 = vpop.f32.mrf.mxu0  ;;  %v271_v50 = vpop.f32.mrf.mxu1 }
  0xf9   :  { %322 = vst.msk [vmem:[%s595_s3] sm:$0xf] %vm321_vm1, %v366_v45  ;;  %326 = vst.msk [vmem:[%s595_s3 + $0x10] sm:$0xf] %vm321_vm1, %v370_v46  ;;  %v282_v52 = vmax.f32 %v254_v47, 0.0  ;;  %v286_v53 = vmax.f32 %v270_v48, 0.0 }
  0xfa   :  { %v258_v54 = vpop.f32.mrf.mxu0  ;;  %v274_v55 = vpop.f32.mrf.mxu1 }
  0xfb   :  { %v367_v56 = vpack.c.bf16 %v282_v52, %v282_v52  ;;  %v371_v57 = vpack.c.bf16 %v286_v53, %v286_v53  ;;  %v259_v58 = vadd.f32 %v258_v54, %v68_v30  ;;  %v275_v59 = vadd.f32 %v274_v55, %v88_v51 }
  0xfc   :  { %v260_v60 = vpop.f32.mrf.mxu0  ;;  %v276_v61 = vpop.f32.mrf.mxu1 }
  0xfd   :  { %323 = vst.msk [vmem:[%s595_s3 + $0x4] sm:$0xf] %vm321_vm1, %v367_v56  ;;  %327 = vst.msk [vmem:[%s595_s3 + $0x14] sm:$0xf] %vm321_vm1, %v371_v57  ;;  %v283_v63 = vmax.f32 %v259_v58, 0.0  ;;  %v287_v0 = vmax.f32 %v275_v59, 0.0 }
  0xfe   :  { %v261_v1 = vpop.f32.mrf.mxu0  ;;  %v277_v2 = vpop.f32.mrf.mxu1 }
  0xff   :  { %v368_v3 = vpack.c.bf16 %v283_v63, %v283_v63  ;;  %v372_v4 = vpack.c.bf16 %v287_v0, %v287_v0  ;;  %v262_v5 = vadd.f32 %v261_v1, %v73_v32  ;;  %v278_v6 = vadd.f32 %v277_v2, %v93_v62 }
 0x100   :  { %v263_v7 = vpop.f32.mrf.mxu0  ;;  %v279_v8 = vpop.f32.mrf.mxu1 }
 0x101   :  { %324 = vst.msk [vmem:[%s595_s3 + $0x8] sm:$0xf] %vm321_vm1, %v368_v3  ;;  %328 = vst.msk [vmem:[%s595_s3 + $0x18] sm:$0xf] %vm321_vm1, %v372_v4  ;;  %v284_v9 = vmax.f32 %v262_v5, 0.0  ;;  %v288_v10 = vmax.f32 %v278_v6, 0.0 }
 0x103   :  { %v369_v11 = vpack.c.bf16 %v284_v9, %v284_v9  ;;  %v373_v12 = vpack.c.bf16 %v288_v10, %v288_v10 }
 0x105   :  { %325 = vst.msk [vmem:[%s595_s3 + $0xc] sm:$0xf] %vm321_vm1, %v369_v11  ;;  %329 = vst.msk [vmem:[%s595_s3 + $0x1c] sm:$0xf] %vm321_vm1, %v373_v12 }

// kernel: hourglass_forward.11
= control target key start
LH: loop header
LB: loop body
LE: loop exit
PB: predicated region body
PF: predicated region fallthrough
CT: control target
= control target key end

     0   :  { %v214_v1 = vmov 0   ;;  %vm101_vm0 = vcmask 785408   ;;  %s285_s0 = inlined_call_operand.vmem [shape: bf16[96,128], index: 0, kind: input, shape index: {}]   ;;  %s286_s1 = inlined_call_operand.vmem [shape: bf16[32,96], index: 1, kind: input, shape index: {}]   ;;  %s287_s2 = inlined_call_operand.vmem [shape: f32[32,1], index: 2, kind: input, shape index: {}]   ;;  %s288_s3 = inlined_call_operand.vmem [shape: f32[32,128], index: 3, kind: output, shape index: {}]  }
   0x1   :  { %v206_v0 = vld [vmem:[%s285_s0 + $0x28] sm:$0xff]   ;;  %205 = vset.pattern.permute.xlu1 %v214_v1  ;;  %204 = vset.pattern.permute.xlu0 %v214_v1  ;;  %v207_v2 = vld [vmem:[%s285_s0 + $0x20] sm:$0xff]   ;;  %v208_v3 = vld [vmem:[%s285_s0 + $0x18] sm:$0xff]  }
   0x2   :  { %187 = vmatprep.subr.bf16.mxu0 %v206_v0  ;;  %v212_v4 = vld [vmem:[%s286_s1] sm:$0xff]   ;;  %v209_v5 = vld [vmem:[%s285_s0 + $0x10] sm:$0xff]   ;;  %v34_v8 = vld [vmem:[%s287_s2 + $0x18] sm:$0xff] }
   0x3   :  { %188 = vmatpush3.bf16.msra.mxu0 %v206_v0  ;;  %199 = vmatprep.mubr.msk.bf16.mxu0 %vm101_vm0, %v212_v4  ;;  %v33_v6 = vld [vmem:[%s287_s2 + $0x10] sm:$0xff]  ;;  %v31_v7 = vld [vmem:[%s287_s2] sm:$0xff]  ;;  %v32_v9 = vld [vmem:[%s287_s2 + $0x8] sm:$0xff] }
   0x4   :  { %189 = vmatprep.subr.bf16.mxu0 %v207_v2  ;;  %47 = vperm.xlu1 %205, %v33_v6   ;;  %v210_v10 = vld [vmem:[%s285_s0 + $0x8] sm:$0xff]   ;;  %v211_v11 = vld [vmem:[%s285_s0] sm:$0xff]  }
   0x5   :  { %37 = vperm.xlu0 %204, %v31_v7   ;;  %v213_v12 = vld [vmem:[%s286_s1 + $0x8] sm:$0xff]  }
   0x7   :  { %190 = vmatpush3.bf16.msra.mxu0 %v207_v2 }
   0x8   :  { %191 = vmatprep.subr.bf16.mxu0 %v208_v3  ;;  %52 = vperm.xlu1 %205, %v34_v8  }
   0x9   :  { %42 = vperm.xlu0 %204, %v32_v9  }
   0xb   :  { %192 = vmatpush3.bf16.msra.mxu0 %v208_v3 }
   0xc   :  { %193 = vmatprep.subr.bf16.mxu0 %v209_v5 }
   0xf   :  { %194 = vmatpush3.bf16.msra.mxu0 %v209_v5 }
  0x10   :  { %195 = vmatprep.subr.bf16.mxu0 %v210_v10 }
  0x13   :  { %196 = vmatpush3.bf16.msra.mxu0 %v210_v10 }
  0x14   :  { %197 = vmatprep.subr.bf16.mxu0 %v211_v11 }
  0x17   :  { %198 = vmatpush3.bf16.msra.mxu0 %v211_v11 }
  0x1a   :  { %200 = vmatmul.mubr.msk.bf16.vlgmr.msra.gmra.mxu0 %vm101_vm0, %v213_v12 }
  0x7f   :  { %v48_v13 = vpop.permute.xlu1 %47 }
  0x80   :  { %v38_v14 = vpop.permute.xlu0 %37 }
  0x83   :  { %v53_v20 = vpop.permute.xlu1 %52 }
  0x84   :  { %v43_v24 = vpop.permute.xlu0 %42 }
  0xda   :  { %v201_v15 = vpop.f32.mrf.mxu0 }
  0xdb   :  { %v151_v16 = vadd.f32 %v201_v15, %v48_v13 }
  0xdc   :  { %v142_v17 = vpop.f32.mrf.mxu0 }
  0xdd   :  { %v159_v18 = vmax.f32 %v151_v16, 0.0  ;;  %v143_v19 = vadd.f32 %v142_v17, %v38_v14 }
  0xde   :  { %v202_v21 = vpop.f32.mrf.mxu0 }
  0xdf   :  { %163 = vst [vmem:[%s288_s3 + $0x10] sm:$0xff] %v159_v18  ;;  %v157_v22 = vmax.f32 %v143_v19, 0.0  ;;  %v154_v23 = vadd.f32 %v202_v21, %v53_v20 }
  0xe0   :  { %v145_v25 = vpop.f32.mrf.mxu0 }
  0xe1   :  { %161 = vst [vmem:[%s288_s3] sm:$0xff] %v157_v22  ;;  %v160_v26 = vmax.f32 %v154_v23, 0.0  ;;  %v146_v27 = vadd.f32 %v145_v25, %v43_v24 }
  0xe3   :  { %164 = vst [vmem:[%s288_s3 + $0x18] sm:$0xff] %v160_v26  ;;  %v158_v28 = vmax.f32 %v146_v27, 0.0 }
  0xe5   :  { %162 = vst [vmem:[%s288_s3 + $0x8] sm:$0xff] %v158_v28 }

</bundles_post_ra>
